<compile_context>
chip_gen: v6e
topology: v6e:2x2x1
jax: 0.10.0
libtpu: 0.0.40
codegen_flags: <defaults>
</compile_context>

<pallas_src>
import jax
import jax.numpy as jnp
from jax.experimental import pallas as pl
from jax.experimental.pallas import tpu as pltpu


def _classifier_head_kernel(cls_ref, wd_ref, bd_ref, wo_ref, bo_ref, y_ref,
                            logits_ref, loss_ref):
    """Multilayer classifier head + BCEWithLogitsLoss (n_labels == 1).

    cls_ref    : (B, H)  f32   CLS features (dense lane-aligned tile)
    wd_ref     : (H, H)  bf16  dense.weight^T
    bd_ref     : (1, H)  f32   dense.bias
    wo_ref     : (1, H)  f32   out_proj.weight (row vector, n_labels == 1)
    bo_ref     : (1, 1)  f32   out_proj.bias   (SMEM scalar)
    y_ref      : (B, 1)  f32   labels in {0, 1}
    logits_ref : (B, 1)  f32
    loss_ref   : (1, 1)  f32   (SMEM scalar)
    """
    cls = cls_ref[...]                                            # (B, H) f32

    # TODO(synk): dropout(p=0.1) is identity here (eval-mode semantics);
    # training-mode dropout would need pltpu.prng_seed / prng_random_bits.

    # dense: bf16 x bf16 MXU dot with f32 accumulate (native MXU datapath on
    # v5e/v6e/v7x); bias add + tanh stay in f32 (v5e VPU/EUP has no bf16).
    z = jnp.dot(cls.astype(jnp.bfloat16), wd_ref[...],
                preferred_element_type=jnp.float32) + bd_ref[...]
    z = jnp.tanh(z)                                               # (B, H) f32

    # out_proj with n_labels == 1: VPU multiply + lane reduction instead of an
    # N=1 MXU dot (which would use 1/256 of the MXU result lanes).
    logits = jnp.sum(z * wo_ref[...], axis=-1, keepdims=True) + bo_ref[0, 0]
    logits_ref[...] = logits.astype(logits_ref.dtype)             # (B, 1)

    # BCEWithLogitsLoss (mean reduction), numerically stable form:
    #   max(x, 0) - x*y + log(1 + exp(-|x|))
    y = y_ref[...]
    per = (jnp.maximum(logits, 0.0) - logits * y
           + jnp.log1p(jnp.exp(-jnp.abs(logits))))
    loss_ref[0, 0] = jnp.mean(per)


def seq_classification_forward(hidden_states, dense_w, dense_b,
                               out_proj_w, out_proj_b, labels):
    """Pallas forward of ModelForSequenceClassification (head='multilayer',
    n_labels=1, labels given, return_features=True).

    hidden_states : (B, S, H) f32  == base_out[0] of the abstracted base model
    dense_w       : (H, H)  torch nn.Linear layout (out, in)
    dense_b       : (H,)
    out_proj_w    : (1, H)
    out_proj_b    : (1,)
    labels        : (B,) or (B, 1), values in {0, 1}
    Returns (loss, logits, features).
    """
    B, S, H = hidden_states.shape
    n_labels = out_proj_w.shape[0]
    assert n_labels == 1, "kernel implements the n_labels == 1 (BCE) path"

    # CLS extraction is a pure slice of the input; doing it in the wrapper
    # gives the kernel a dense (B, H) tile and removes the redundant
    # `features` HBM round trip.
    features = hidden_states[:, 0, :]                              # (B, H) f32

    wd_t = jnp.transpose(dense_w).astype(jnp.bfloat16)             # (H, H): x @ W.T layout
    bd = dense_b.reshape(1, H).astype(jnp.float32)
    wo_row = out_proj_w.reshape(1, H).astype(jnp.float32)
    bo = out_proj_b.reshape(1, 1).astype(jnp.float32)
    y = labels.reshape(B, 1).astype(jnp.float32)

    vmem = pltpu.MemorySpace.VMEM
    smem = pltpu.MemorySpace.SMEM

    logits, loss = pl.pallas_call(
        _classifier_head_kernel,
        out_shape=(
            jax.ShapeDtypeStruct((B, n_labels), jnp.float32),      # logits
            jax.ShapeDtypeStruct((1, 1), jnp.float32),             # loss
        ),
        in_specs=[
            pl.BlockSpec(memory_space=vmem),   # cls features (B, H)
            pl.BlockSpec(memory_space=vmem),   # dense weight^T (bf16)
            pl.BlockSpec(memory_space=vmem),   # dense bias
            pl.BlockSpec(memory_space=vmem),   # out_proj weight row
            pl.BlockSpec(memory_space=smem),   # out_proj bias scalar
            pl.BlockSpec(memory_space=vmem),   # labels
        ],
        out_specs=(
            pl.BlockSpec(memory_space=vmem),   # logits
            pl.BlockSpec(memory_space=smem),   # loss scalar
        ),
    )(features, wd_t, bd, wo_row, bo, y)

    return loss[0, 0], logits, features


def _reference(hidden_states, dense_w, dense_b, out_proj_w, out_proj_b, labels):
    # Mirrors the kernel's bf16-weight rounding so tolerances can stay tight.
    cls = hidden_states[:, 0, :]
    wd_t = jnp.transpose(dense_w).astype(jnp.bfloat16)
    z = jnp.tanh(jnp.dot(cls.astype(jnp.bfloat16), wd_t,
                         preferred_element_type=jnp.float32)
                 + dense_b.reshape(1, -1))
    logits = (jnp.sum(z * out_proj_w.reshape(1, -1), axis=-1, keepdims=True)
              + out_proj_b.reshape(1, 1))
    y = labels.reshape(-1, 1).astype(jnp.float32)
    per = (jnp.maximum(logits, 0.0) - logits * y
           + jnp.log1p(jnp.exp(-jnp.abs(logits))))
    return jnp.mean(per), logits, cls


if __name__ == "__main__":
    B, S, H, n_labels = 8, 8, 128, 1

    key = jax.random.PRNGKey(0)
    k_h, k_wd, k_bd, k_wo, k_bo, k_y = jax.random.split(key, 6)

    hidden_states = jax.random.normal(k_h, (B, S, H), dtype=jnp.float32)

    # Deterministic init mimicking nn.Linear's uniform(-1/sqrt(fan_in), 1/sqrt(fan_in)).
    lim = 1.0 / jnp.sqrt(jnp.float32(H))
    dense_w = jax.random.uniform(k_wd, (H, H), jnp.float32, -lim, lim)        # dense.weight
    dense_b = jax.random.uniform(k_bd, (H,), jnp.float32, -lim, lim)          # dense.bias
    out_proj_w = jax.random.uniform(k_wo, (n_labels, H), jnp.float32, -lim, lim)  # out_proj.weight
    out_proj_b = jax.random.uniform(k_bo, (n_labels,), jnp.float32, -lim, lim)    # out_proj.bias

    labels = jax.random.bernoulli(k_y, 0.5, (B,)).astype(jnp.float32)

    loss, logits, features = jax.block_until_ready(
        seq_classification_forward(hidden_states, dense_w, dense_b,
                                   out_proj_w, out_proj_b, labels))

    loss_ref, logits_ref, feat_ref = _reference(
        hidden_states, dense_w, dense_b, out_proj_w, out_proj_b, labels)

    assert jnp.allclose(features, feat_ref, atol=1e-6), "features mismatch"
    assert jnp.allclose(logits, logits_ref, atol=1e-4), "logits mismatch"
    assert jnp.allclose(loss, loss_ref, atol=1e-4), "loss mismatch"

    print("KERNEL_OK")
</pallas_src>

<mosaic_0001>
module attributes {stable_mosaic.version = 11 : i64} {
  func.func @_classifier_head_kernel(%arg0: memref<8x128xf32, #tpu.memory_space<vmem>>, %arg1: memref<128x128xbf16, #tpu.memory_space<vmem>>, %arg2: memref<1x128xf32, #tpu.memory_space<vmem>>, %arg3: memref<1x128xf32, #tpu.memory_space<vmem>>, %arg4: memref<1x1xf32, #tpu.memory_space<smem>>, %arg5: memref<8x1xf32, #tpu.memory_space<vmem>>, %arg6: memref<8x1xf32, #tpu.memory_space<vmem>>, %arg7: memref<1x1xf32, #tpu.memory_space<smem>>) attributes {dimension_semantics = [], scalar_prefetch = 0 : i64, scratch_operands = 0 : i64, tpu.core_type = #tpu.core_type<tc>} {
    %c0 = arith.constant 0 : index
    %c0_0 = arith.constant 0 : index
    %0 = vector.load %arg0[%c0, %c0_0] : memref<8x128xf32, #tpu.memory_space<vmem>>, vector<8x128xf32>
    %1 = arith.truncf %0 : vector<8x128xf32> to vector<8x128xbf16>
    %c0_1 = arith.constant 0 : index
    %c0_2 = arith.constant 0 : index
    %2 = vector.load %arg1[%c0_1, %c0_2] : memref<128x128xbf16, #tpu.memory_space<vmem>>, vector<128x128xbf16>
    %cst = arith.constant dense<0.000000e+00> : vector<8x128xf32>
    %3 = tpu.matmul %1, %2, %cst {dimension_numbers = #tpu.dot_dimension_numbers<[1], [0], [0], [1], [0, 0, 1, 1], [], []>} : vector<8x128xbf16>, vector<128x128xbf16>, vector<8x128xf32> -> vector<8x128xf32>
    %c0_3 = arith.constant 0 : index
    %c0_4 = arith.constant 0 : index
    %4 = vector.load %arg2[%c0_3, %c0_4] : memref<1x128xf32, #tpu.memory_space<vmem>>, vector<1x128xf32>
    %5 = vector.broadcast %4 : vector<1x128xf32> to vector<8x128xf32>
    %6 = arith.addf %3, %5 : vector<8x128xf32>
    %7 = math.tanh %6 : vector<8x128xf32>
    %c0_5 = arith.constant 0 : index
    %c0_6 = arith.constant 0 : index
    %8 = vector.load %arg3[%c0_5, %c0_6] : memref<1x128xf32, #tpu.memory_space<vmem>>, vector<1x128xf32>
    %9 = vector.broadcast %8 : vector<1x128xf32> to vector<8x128xf32>
    %10 = arith.mulf %7, %9 : vector<8x128xf32>
    %cst_7 = arith.constant dense<0.000000e+00> : vector<8xf32>
    %11 = vector.multi_reduction <add>, %10, %cst_7 [1] : vector<8x128xf32> to vector<8xf32>
    %12 = vector.shape_cast %11 : vector<8xf32> to vector<8x1xf32>
    %c0_8 = arith.constant 0 : index
    %c0_9 = arith.constant 0 : index
    %13 = memref.load %arg4[%c0_8, %c0_9] : memref<1x1xf32, #tpu.memory_space<smem>>
    %14 = vector.broadcast %13 : f32 to vector<8x1xf32>
    %15 = arith.addf %12, %14 : vector<8x1xf32>
    %c0_10 = arith.constant 0 : index
    %c0_11 = arith.constant 0 : index
    %16 = vector.load %arg6[%c0_10, %c0_11] : memref<8x1xf32, #tpu.memory_space<vmem>>, vector<8x1xf32>
    tpu.vector_store %arg6[%c0_10, %c0_11], %15 {strides = array<i32>} : memref<8x1xf32, #tpu.memory_space<vmem>>, vector<8x1xf32>,
    %c0_12 = arith.constant 0 : index
    %c0_13 = arith.constant 0 : index
    %17 = vector.load %arg5[%c0_12, %c0_13] : memref<8x1xf32, #tpu.memory_space<vmem>>, vector<8x1xf32>
    %cst_14 = arith.constant 0.000000e+00 : f32
    %18 = vector.broadcast %cst_14 : f32 to vector<8x1xf32>
    %19 = arith.maximumf %15, %18 : vector<8x1xf32>
    %20 = arith.mulf %15, %17 : vector<8x1xf32>
    %21 = arith.subf %19, %20 : vector<8x1xf32>
    %22 = math.absf %15 : vector<8x1xf32>
    %cst_15 = arith.constant 0.000000e+00 : f32
    %23 = vector.broadcast %cst_15 : f32 to vector<8x1xf32>
    %24 = arith.subf %23, %22 : vector<8x1xf32>
    %25 = math.exp %24 : vector<8x1xf32>
    %26 = math.log1p %25 : vector<8x1xf32>
    %27 = arith.addf %21, %26 : vector<8x1xf32>
    %28 = vector.shape_cast %27 : vector<8x1xf32> to vector<1x8x1xf32>
    %cst_16 = arith.constant dense<0.000000e+00> : vector<1xf32>
    %29 = vector.multi_reduction <add>, %28, %cst_16 [1, 2] : vector<1x8x1xf32> to vector<1xf32>
    %30 = vector.shape_cast %29 : vector<1xf32> to vector<1x1x1xf32>
    %31 = vector.extract %30[0, 0, 0] : f32 from vector<1x1x1xf32>
    %cst_17 = arith.constant 8.000000e+00 : f32
    %32 = arith.divf %31, %cst_17 : f32
    %c0_18 = arith.constant 0 : index
    %c0_19 = arith.constant 0 : index
    %33 = memref.load %arg7[%c0_18, %c0_19] : memref<1x1xf32, #tpu.memory_space<smem>>
    memref.store %32, %arg7[%c0_18, %c0_19] : memref<1x1xf32, #tpu.memory_space<smem>>
    return
  }
}

</mosaic_0001>

<bundles_post_ra>
// kernel: tpu_custom_call.1
= control target key start
LH: loop header
LB: loop body
LE: loop exit
PB: predicated region body
PF: predicated region fallthrough
CT: control target
= control target key end

     0   :  { %14 = vsyncpa [#allocation4], 0  ;;  %s387_s0 = inlined_call_operand.vmem [shape: f32[8,128], index: 0, kind: input, shape index: {}]   ;;  %s388_s1 = inlined_call_operand.hbm [shape: bf16[128,128], index: 1, kind: input, shape index: {}]   ;;  %s389_s2 = inlined_call_operand.vmem [shape: f32[1,128], index: 2, kind: input, shape index: {}]   ;;  %s390_s3 = inlined_call_operand.vmem [shape: f32[1,128], index: 3, kind: input, shape index: {}]   ;;  %s391_s4 = inlined_call_operand.<no memory space> [shape: f32[1,1], index: 4, kind: input, shape index: {}]   ;;  %s392_s5 = inlined_call_operand.vmem [shape: f32[8,1], index: 5, kind: input, shape index: {}]   ;;  %s393_s6 = inlined_call_operand.vmem [shape: f32[8,1], index: 6, kind: output, shape index: {0}]   ;;  %s394_s7 = inlined_call_operand.hbm [shape: f32[1,1], index: 7, kind: output, shape index: {1}]  }
   0x1   :  { %15 = vsyncpa [#allocation5], 0  ;;  %s315_s24 = smov [#allocation3]  }
   0x2   :  { %s23_s25 = sshll.u32 %s315_s24, 4  ;;  %s24_s25 = int_to_ptr.vmem [resolvable:$true] %s23_s25 }
   0x3   :  { %s291_s26 = scalar_lea.vmem %s24_s25, 1024  ;;  %p296_p1 = scmp.lt.s32.totalorder %s24_s25, %s24_s25 }
   0x4   :  { %p292_p0 = scmp.ne.s32.totalorder %s24_s25, %s291_s26  ;;  %p297_p2 = scmp.lt.s32.totalorder %s291_s26, %s291_s26 }
   0x6   :  { %p298_p3 = por %p297_p2, %p296_p1 }
   0x8   :  { %p299_p4 = pnand %p298_p3, %p292_p0 }
   0xa   :  { %302 = shalt.err (!%p299_p4)
}
   0xb   :  { %s316_s27 = smov 64   ;;  %s317_s28 = smov 4  }
   0xc   :  { %29 = dma.hbm_to_vmem [thread:$0]  %s388_s1, 1024, %s24_s25, [#allocation4], %s316_s27, %s316_s27, %s317_s28  }
   0xd   :  { %311 = dma.done.wait [#allocation4], 1024  }
   0xe   :  { %312 = vsyncadd [#allocation4], 4294966272  ;;  %v318_v0 = vmov 0.0   ;;  %vm319_vm0 = vmmov 0   ;;  %v269_v1 = vld [vmem:[#allocation3 + $0x38] sm:$0xff]   ;;  %v270_v2 = vld [vmem:[#allocation3 + $0x30] sm:$0xff]   ;;  %v167_v20 = vstv %s391_s4 }
   0xf   :  { %241 = vmatprep.subr.bf16.mxu0 %v318_v0  ;;  %257 = vmatprep.mubr.msk.bf16.mxu0 %vm319_vm0, %v318_v0  ;;  %v271_v3 = vld [vmem:[#allocation3 + $0x28] sm:$0xff]   ;;  %v272_v4 = vld [vmem:[#allocation3 + $0x20] sm:$0xff]   ;;  %v273_v5 = vld [vmem:[#allocation3 + $0x18] sm:$0xff]   ;;  %vm169_vm1 = vcmask 7168  }
  0x10   :  { %242 = vmatpush3.bf16.msra.mxu0 %v269_v1  ;;  %v274_v6 = vld [vmem:[#allocation3 + $0x10] sm:$0xff]   ;;  %v275_v7 = vld [vmem:[#allocation3 + $0x8] sm:$0xff]   ;;  %v276_v8 = vld [vmem:[#allocation3] sm:$0xff]  }
  0x11   :  { %243 = vmatprep.subr.bf16.mxu0 %v318_v0  ;;  %v42_v9 = vld [vmem:[%s387_s0] sm:$0xff] }
  0x12   :  { %v43_v10 = vpack.c.bf16 %v42_v9, %v42_v9  ;;  %v222_v11 = vld [vmem:[%s389_s2] ss:$0 sm:$0xff] }
  0x13   :  { %v231_v17 = vld [vmem:[%s390_s3] ss:$0 sm:$0xff] }
  0x14   :  { %244 = vmatpush3.bf16.msra.mxu0 %v270_v2  ;;  %v171_v29 = vld [vmem:[%s392_s5] sm:$0xff] }
  0x15   :  { %245 = vmatprep.subr.bf16.mxu0 %v318_v0 }
  0x18   :  { %246 = vmatpush3.bf16.msra.mxu0 %v271_v3 }
  0x19   :  { %247 = vmatprep.subr.bf16.mxu0 %v318_v0 }
  0x1c   :  { %248 = vmatpush3.bf16.msra.mxu0 %v272_v4 }
  0x1d   :  { %249 = vmatprep.subr.bf16.mxu0 %v318_v0 }
  0x20   :  { %250 = vmatpush3.bf16.msra.mxu0 %v273_v5 }
  0x21   :  { %251 = vmatprep.subr.bf16.mxu0 %v318_v0 }
  0x24   :  { %252 = vmatpush3.bf16.msra.mxu0 %v274_v6 }
  0x25   :  { %253 = vmatprep.subr.bf16.mxu0 %v318_v0 }
  0x28   :  { %254 = vmatpush3.bf16.msra.mxu0 %v275_v7 }
  0x29   :  { %255 = vmatprep.subr.bf16.mxu0 %v318_v0 }
  0x2c   :  { %256 = vmatpush3.bf16.msra.mxu0 %v276_v8 }
  0x2f   :  { %258 = vmatmul.mubr.bf16.vlgmr.msra.gmra.mxu0 %v43_v10 }
  0xef   :  { %v149_v12 = vpop.f32.mrf.mxu0 }
  0xf0   :  { %v150_v13 = vadd.f32 %v222_v11, %v149_v12 }
  0xf1   :  { %v259_v14 = vpop.f32.mrf.mxu0 }
  0xf2   :  { %277 = vtanh.f32 %v150_v13 }
  0xf3   :  { %v152_v15 = vpop.f32.mrf.mxu0 }
  0xf5   :  { %v260_v16 = vpop.f32.mrf.mxu0 }
  0xff   :  { %v278_v18 = vpop.eup %277 }
 0x100   :  { %v163_v19 = vmul.f32 %v278_v18, %v231_v17 }
 0x102   :  { %164 = vadd.xlane.f32.xlu0 %v163_v19 }
 0x18b   :  { %v165_v21 = vpop.xlane.xlu0 %164 }
 0x18c   :  { %v168_v22 = vadd.f32 %v167_v20, %v165_v21 }
 0x18e   :  { %v175_v23 = vand.u32 2147483647, %v168_v22  ;;  %170 = vst.msk [vmem:[%s393_s6] sm:$0xff] %vm169_vm1, %v168_v22  ;;  %v172_v31 = vmax.f32 %v168_v22, 0.0  ;;  %v173_v32 = vmul.f32 %v171_v29, %v168_v22  ;;  %s320_s6 = smov [#allocation6]  }
 0x190   :  { %v176_v24 = vsub.f32 0.0, %v175_v23  ;;  %v174_v37 = vsub.f32 %v172_v31, %v173_v32 }
 0x192   :  { %v177_v25 = vmul.f32 1.442695, %v176_v24 }
 0x194   :  { %279 = vpow2.f32 %v177_v25 }
 0x1a1   :  { %v280_v26 = vpop.eup %279 }
 0x1a2   :  { %v179_v27 = vadd.f32 1.0, %v280_v26  ;;  %v182_v28 = vmul.f32 -0.5, %v280_v26  ;;  %v185_v33 = vand.u32 2147483647, %v280_v26 }
 0x1a4   :  { %281 = vlog2.f32 %v179_v27  ;;  %v183_v30 = vadd.f32 1.0, %v182_v28  ;;  %vm186_vm2 = vcmp.lt.f32.partialorder %v185_v33, 0.0004427343 }
 0x1a6   :  { %v184_v36 = vmul.f32 %v280_v26, %v183_v30 }
 0x1b1   :  { %v282_v34 = vpop.eup %281 }
 0x1b2   :  { %v181_v35 = vmul.f32 0.6931472, %v282_v34 }
 0x1b4   :  { %v187_v38 = vsel %vm186_vm2, %v184_v36, %v181_v35 }
 0x1b5   :  { %v188_v39 = vadd.f32 %v187_v38, %v174_v37 }
 0x1b7   :  { %v189_v40 = vsel %vm169_vm1, %v188_v39, 0.0 }
 0x1b8   :  { %190 = vadd.xlane.f32.xlu0 %v189_v40 }
 0x241   :  { %v191_v41 = vpop.xlane.xlu0 %190 }
 0x242   :  { %v192_v42 = vrot.slane %v191_v41, 4 }
 0x244   :  { %v193_v43 = vadd.f32 %v192_v42, %v191_v41 }
 0x246   :  { %v194_v44 = vrot.slane %v193_v43, 2 }
 0x248   :  { %v195_v45 = vadd.f32 %v194_v44, %v193_v43 }
 0x24a   :  { %v196_v46 = vrot.slane %v195_v45, 1 }
 0x24c   :  { %v197_v47 = vadd.f32 %v196_v46, %v195_v45 }
 0x24e   :  { %261 = vpush %v197_v47 }
 0x27f   :  { %s262_s4 = spop %261 }
 0x280   :  { %s201_s5 = smul.f32 0.125, %s262_s4 }
 0x282   :  { %203 = sst [smem:[#allocation6]] %s201_s5 }
 0x283   :  { %213 = dma.smem_to_hbm %s320_s6, 16, %s394_s7, [#allocation5]  }
 0x284   :  { %313 = dma.done.wait [#allocation5], 16  }
 0x285   :  { %314 = vsyncadd [#allocation5], 4294967280 }
 0x286   :  { %219 = sfence }
 0x287   :  { %220 = vsyncpa [#allocation4], 1 }
 0x288   :  { %221 = vsyncpa [#allocation5], 1 }

</bundles_post_ra>
